<compile_context>
chip_gen: v5e
topology: v5e:2x2
jax: 0.10.0
libtpu: 0.0.40
codegen_flags: <defaults>
</compile_context>

<pallas_src>
import functools

import jax
import jax.numpy as jnp
from jax.experimental import pallas as pl
from jax.experimental.pallas import tpu as pltpu


def _giou_partials_kernel(pred_ref, gt_ref,
                          inter_ref, pg_ref,
                          pmax_ref, pmin_ref, gmax_ref, gmin_ref,
                          *, num_points: int, tile_p: int, steps: int,
                          ragged: bool):
    """Per-(slice s, tile k) partial reductions for GIoU.

    Outputs (accumulated in place across the inner `k` axis; one resident
    block per outer `s` slice):
      inter_ref (1, N, 1): sum(sigmoid(pred) * gt) per row
      pg_ref    (1, N, 1): sum(sigmoid(pred) + gt) per row
      p/g max/min (1,1,1): nonzero-column-index extrema for the slice
                           (sentinels -1 / num_points when no nonzero seen).
    """
    s = pl.program_id(0)
    k = pl.program_id(1)

    @pl.when(k == 0)
    def _init():
        inter_ref[...] = jnp.zeros_like(inter_ref)
        pg_ref[...] = jnp.zeros_like(pg_ref)
        pmax_ref[...] = jnp.full_like(pmax_ref, -1.0)
        pmin_ref[...] = jnp.full_like(pmin_ref, float(num_points))
        gmax_ref[...] = jnp.full_like(gmax_ref, -1.0)
        gmin_ref[...] = jnp.full_like(gmin_ref, float(num_points))

    # Cast to f32 in-register (inputs may be bf16 logits / int8 masks).
    # TODO(synk): on v6e/v7x bf16 inputs could keep the VPU/EUP math in bf16
    # (f32 accumulation only); kept in f32 here for v5e compatibility.
    pred = jax.nn.sigmoid(pred_ref[...].astype(jnp.float32))   # (N, TILE_P)
    gt = gt_ref[...].astype(jnp.float32)                       # (N, TILE_P)

    # Global column index of this tile's lanes (f32 exact for P <= 2^24,
    # asserted in the wrapper).  Uses the UNCLAMPED tile index so that the
    # out-of-range columns of ragged / padded tiles are masked out below.
    tile_idx = s * steps + k
    col = (jax.lax.broadcasted_iota(jnp.int32, (1, tile_p), 1)
           + tile_idx * tile_p).astype(jnp.float32)            # (1, TILE_P)

    if ragged:  # static: only emitted when P does not fill the padded grid
        valid = col < float(num_points)                        # (1, TILE_P)
        pred = jnp.where(valid, pred, 0.0)
        gt = jnp.where(valid, gt, 0.0)

    # --- per-row partial sums, accumulated in the resident output blocks ---
    inter_ref[...] += jnp.sum(pred * gt, axis=-1, keepdims=True)[None]
    pg_ref[...] += jnp.sum(pred + gt, axis=-1, keepdims=True)[None]

    # --- nonzero()[:, -1] min / max via per-column presence rows ------------
    # pred = sigmoid(.) >= 0 and gt masks >= 0, so a sublane max detects any
    # nonzero in the column; then only tiny (1, TILE_P) rows are selected and
    # reduced (instead of 4 full-tile where + reduce-alls).
    pred_has = jnp.max(pred, axis=0, keepdims=True) != 0.0     # (1, TILE_P)
    gt_has = jnp.max(gt, axis=0, keepdims=True) != 0.0         # (1, TILE_P)

    neg = jnp.float32(-1.0)
    pos = jnp.float32(num_points)
    pmax_ref[...] = jnp.maximum(
        pmax_ref[...],
        jnp.max(jnp.where(pred_has, col, neg), keepdims=True)[None])
    pmin_ref[...] = jnp.minimum(
        pmin_ref[...],
        jnp.min(jnp.where(pred_has, col, pos), keepdims=True)[None])
    gmax_ref[...] = jnp.maximum(
        gmax_ref[...],
        jnp.max(jnp.where(gt_has, col, neg), keepdims=True)[None])
    gmin_ref[...] = jnp.minimum(
        gmin_ref[...],
        jnp.min(jnp.where(gt_has, col, pos), keepdims=True)[None])


def _vmem_budget_bytes():
    """Generation-aware VMEM budget (double-buffered inputs) and scoped limit."""
    cap = None
    try:
        cap = getattr(pltpu.get_tpu_info(), "vmem_capacity_bytes", None)
    except Exception:
        cap = None
    if not cap:
        cap = 64 * 1024 * 1024  # conservative fallback: v7x per-TC physical VMEM
    limit = min(int(cap * 3 // 4), 112 * 1024 * 1024)   # ~96 MiB v5e/v6e, ~48 MiB v7x
    budget = int(limit * 0.7)                            # for pipelined input blocks
    return budget, limit


def _pick_tile_p(n: int, p: int, itemsize_sum: int, budget: int) -> int:
    """Largest lane-aligned (multiple of 128) tile whose double-buffered
    (pred + gt) blocks stay under `budget`, capped at P rounded up to 128."""
    p_padded = ((p + 127) // 128) * 128
    per_col = 2 * n * itemsize_sum          # 2 pipeline buffers x both inputs
    tile = budget // max(per_col, 1)
    tile = max(128, (tile // 128) * 128)
    return min(tile, p_padded)


def giou_loss(pred_masks: jax.Array, gt_masks: jax.Array,
              eps: float = 1e-6, *, tile_p: int | None = None,
              n_split: int | None = None) -> jax.Array:
    """Pallas TPU implementation of GIoULoss.forward. Returns a scalar.

    For best throughput pass narrow inputs (bf16 logits, int8/uint8 masks);
    the kernel casts to f32 in-register.
    """
    assert pred_masks.shape == gt_masks.shape and pred_masks.ndim == 2
    n, p = pred_masks.shape
    assert p <= (1 << 24), "f32 column indices are exact only for P <= 2^24"

    itemsize_sum = pred_masks.dtype.itemsize + gt_masks.dtype.itemsize
    budget, vmem_limit = _vmem_budget_bytes()
    if tile_p is None:
        tile_p = _pick_tile_p(n, p, itemsize_sum, budget)
    assert tile_p % 128 == 0, "tile_p must be lane-aligned (multiple of 128)"

    total_tiles = pl.cdiv(p, tile_p)
    if n_split is None:
        n_split = 2 if total_tiles >= 2 else 1   # use both TCs on v7x
    n_split = max(1, min(n_split, total_tiles))
    steps = pl.cdiv(total_tiles, n_split)
    last_tile = total_tiles - 1
    # True when some tile columns fall past P (ragged tail or padded grid).
    ragged = (n_split * steps * tile_p) != p
    needs_clamp = (n_split * steps) > total_tiles

    kernel = functools.partial(
        _giou_partials_kernel, num_points=p, tile_p=tile_p, steps=steps,
        ragged=ragged)

    if needs_clamp:
        # Padded (fully out-of-range) tiles re-read the last real tile; their
        # columns are >= P so the in-kernel mask zeroes every element.
        def in_map(s, k):
            return (0, jnp.minimum(s * steps + k, last_tile))
    else:
        def in_map(s, k):
            return (0, s * steps + k)

    def out_map(s, k):
        return (s, 0, 0)

    row_part = jax.ShapeDtypeStruct((n_split, n, 1), jnp.float32)
    sc_part = jax.ShapeDtypeStruct((n_split, 1, 1), jnp.float32)

    bytes_in = (pred_masks.size * pred_masks.dtype.itemsize
                + gt_masks.size * gt_masks.dtype.itemsize)
    cost = pl.CostEstimate(
        flops=8 * n * p,            # mul/add/compare/select per element
        transcendentals=n * p,      # sigmoid
        bytes_accessed=bytes_in + n_split * (2 * n + 4) * 4,
    )

    inter, pg, pmax, pmin, gmax, gmin = pl.pallas_call(
        kernel,
        out_shape=(row_part, row_part, sc_part, sc_part, sc_part, sc_part),
        grid_spec=pltpu.PrefetchScalarGridSpec(
            num_scalar_prefetch=0,
            grid=(n_split, steps),
            in_specs=[
                pl.BlockSpec((n, tile_p), in_map),
                pl.BlockSpec((n, tile_p), in_map),
            ],
            out_specs=[
                pl.BlockSpec((1, n, 1), out_map),
                pl.BlockSpec((1, n, 1), out_map),
                pl.BlockSpec((1, 1, 1), out_map),
                pl.BlockSpec((1, 1, 1), out_map),
                pl.BlockSpec((1, 1, 1), out_map),
                pl.BlockSpec((1, 1, 1), out_map),
            ],
        ),
        compiler_params=pltpu.CompilerParams(
            dimension_semantics=("parallel", "arbitrary"),
            vmem_limit_bytes=vmem_limit,
        ),
        cost_estimate=cost,
    )(pred_masks, gt_masks)

    # Tiny cross-slice combine + finalize (runs once; exact division).
    inter = jnp.sum(inter[:, :, 0], axis=0)      # (N,)
    pg = jnp.sum(pg[:, :, 0], axis=0)            # (N,)
    union = pg - inter
    iou = inter / (union + eps)

    p_max = jnp.max(pmax)
    p_min = jnp.min(pmin)
    g_max = jnp.max(gmax)
    g_min = jnp.min(gmin)
    enclosing = (p_max - p_min) * (g_max - g_min)
    giou = iou - (enclosing - union) / (enclosing + eps)

    loss_giou = jnp.mean(1.0 - giou)
    loss_iou = jnp.mean(1.0 - iou)
    # torch: if len(pred_coords) == 0 or len(gt_coords) == 0 -> 1 - iou.mean()
    has_both = jnp.logical_and(p_max >= 0.0, g_max >= 0.0)
    return jnp.where(has_both, loss_giou, loss_iou)


def _giou_loss_ref(pred_masks, gt_masks, eps=1e-6):
    """Pure-JAX reference mirroring the torch module (fixed-shape nonzero)."""
    pred = jax.nn.sigmoid(pred_masks.astype(jnp.float32))
    gt = gt_masks.astype(jnp.float32)
    inter = jnp.sum(pred * gt, axis=-1)
    union = jnp.sum(pred, axis=-1) + jnp.sum(gt, axis=-1) - inter
    iou = inter / (union + eps)

    n, p = pred.shape
    col = jnp.broadcast_to(jnp.arange(p, dtype=jnp.float32), (n, p))
    pred_nz = pred != 0.0
    gt_nz = gt != 0.0
    p_max = jnp.max(jnp.where(pred_nz, col, -1.0))
    p_min = jnp.min(jnp.where(pred_nz, col, float(p)))
    g_max = jnp.max(jnp.where(gt_nz, col, -1.0))
    g_min = jnp.min(jnp.where(gt_nz, col, float(p)))
    enclosing = (p_max - p_min) * (g_max - g_min)
    giou = iou - (enclosing - union) / (enclosing + eps)
    loss_giou = jnp.mean(1.0 - giou)
    loss_iou = jnp.mean(1.0 - iou)
    has_both = jnp.logical_and(jnp.any(pred_nz), jnp.any(gt_nz))
    return jnp.where(has_both, loss_giou, loss_iou)


if __name__ == "__main__":
    key = jax.random.PRNGKey(0)
    k1, k2, k3, k4 = jax.random.split(key, 4)

    tol = dict(rtol=1e-3, atol=1e-3)

    # 1) lane-aligned P, auto tile (single block)
    N, P = 16, 1024
    pred = jax.random.normal(k1, (N, P), dtype=jnp.float32)                # logits
    gt = (jax.random.uniform(k2, (N, P)) < 0.5).astype(jnp.float32)        # binary
    out = jax.block_until_ready(giou_loss(pred, gt))
    ref = jax.block_until_ready(_giou_loss_ref(pred, gt))
    assert jnp.allclose(out, ref, **tol), (out, ref)

    # 2) forced small tile -> multi-step pipeline + 2-slice parallel split
    out2 = jax.block_until_ready(giou_loss(pred, gt, tile_p=256))
    assert jnp.allclose(out2, ref, **tol), (out2, ref)

    # 3) P not a multiple of 128: masked ragged tail; odd tile count also
    #    exercises the clamped padding tile on the split grid.
    P3 = 1000
    pred3 = jax.random.normal(k3, (N, P3), dtype=jnp.float32)
    gt3 = (jax.random.uniform(k4, (N, P3)) < 0.5).astype(jnp.float32)
    ref3 = jax.block_until_ready(_giou_loss_ref(pred3, gt3))
    out3a = jax.block_until_ready(giou_loss(pred3, gt3))               # single ragged tile
    out3b = jax.block_until_ready(giou_loss(pred3, gt3, tile_p=384))   # 3 tiles padded to 4
    assert jnp.allclose(out3a, ref3, **tol), (out3a, ref3)
    assert jnp.allclose(out3b, ref3, **tol), (out3b, ref3)

    # 4) narrow inputs stream as-is (bf16 logits + int8 masks)
    pred_bf16 = pred.astype(jnp.bfloat16)
    gt_i8 = gt.astype(jnp.int8)
    out4 = jax.block_until_ready(giou_loss(pred_bf16, gt_i8, tile_p=256))
    ref4 = jax.block_until_ready(
        _giou_loss_ref(pred_bf16.astype(jnp.float32), gt_i8.astype(jnp.float32)))
    assert jnp.allclose(out4, ref4, **tol), (out4, ref4)

    # 5) empty-gt fallback branch (torch's len(gt_coords) == 0 path)
    gt_empty = jnp.zeros((N, P), jnp.float32)
    out5 = jax.block_until_ready(giou_loss(pred, gt_empty, tile_p=256))
    ref5 = jax.block_until_ready(_giou_loss_ref(pred, gt_empty))
    assert jnp.allclose(out5, ref5, **tol), (out5, ref5)

    print("KERNEL_OK")
</pallas_src>

<mosaic_0001>
module attributes {stable_mosaic.version = 11 : i64} {
  func.func @_giou_partials_kernel(%arg0: i32, %arg1: i32, %arg2: memref<16x1024xf32, #tpu.memory_space<vmem>>, %arg3: memref<16x1024xf32, #tpu.memory_space<vmem>>, %arg4: memref<1x16x1xf32, #tpu.memory_space<vmem>>, %arg5: memref<1x16x1xf32, #tpu.memory_space<vmem>>, %arg6: memref<1x1x1xf32, #tpu.memory_space<vmem>>, %arg7: memref<1x1x1xf32, #tpu.memory_space<vmem>>, %arg8: memref<1x1x1xf32, #tpu.memory_space<vmem>>, %arg9: memref<1x1x1xf32, #tpu.memory_space<vmem>>) attributes {dimension_semantics = [#tpu.dimension_semantics<parallel>, #tpu.dimension_semantics<arbitrary>], iteration_bounds = array<i64: 1, 1>, scalar_prefetch = 0 : i64, scratch_operands = 0 : i64, tpu.core_type = #tpu.core_type<tc>, window_params = [{transform_indices = @transform_0, window_bounds = array<i64: 16, 1024>}, {transform_indices = @transform_1, window_bounds = array<i64: 16, 1024>}, {transform_indices = @transform_2, window_bounds = array<i64: 1, 16, 1>}, {transform_indices = @transform_3, window_bounds = array<i64: 1, 16, 1>}, {transform_indices = @transform_4, window_bounds = array<i64: 1, 1, 1>}, {transform_indices = @transform_5, window_bounds = array<i64: 1, 1, 1>}, {transform_indices = @transform_6, window_bounds = array<i64: 1, 1, 1>}, {transform_indices = @transform_7, window_bounds = array<i64: 1, 1, 1>}]} {
    %c0_i32 = arith.constant 0 : i32
    %0 = arith.cmpi eq, %arg1, %c0_i32 : i32
    %1 = arith.extui %0 : i1 to i32
    %c0_i32_0 = arith.constant 0 : i32
    %2 = arith.cmpi ne, %1, %c0_i32_0 : i32
    scf.if %2 {
      %cst_54 = arith.constant 0.000000e+00 : f32
      %83 = vector.broadcast %cst_54 : f32 to vector<1x16x1xf32>
      %c0_55 = arith.constant 0 : index
      %c0_56 = arith.constant 0 : index
      %c0_57 = arith.constant 0 : index
      %84 = vector.load %arg4[%c0_55, %c0_56, %c0_57] : memref<1x16x1xf32, #tpu.memory_space<vmem>>, vector<1x16x1xf32>
      tpu.vector_store %arg4[%c0_55, %c0_56, %c0_57], %83 {strides = array<i32>} : memref<1x16x1xf32, #tpu.memory_space<vmem>>, vector<1x16x1xf32>,
      %cst_58 = arith.constant 0.000000e+00 : f32
      %85 = vector.broadcast %cst_58 : f32 to vector<1x16x1xf32>
      %c0_59 = arith.constant 0 : index
      %c0_60 = arith.constant 0 : index
      %c0_61 = arith.constant 0 : index
      %86 = vector.load %arg5[%c0_59, %c0_60, %c0_61] : memref<1x16x1xf32, #tpu.memory_space<vmem>>, vector<1x16x1xf32>
      tpu.vector_store %arg5[%c0_59, %c0_60, %c0_61], %85 {strides = array<i32>} : memref<1x16x1xf32, #tpu.memory_space<vmem>>, vector<1x16x1xf32>,
      %cst_62 = arith.constant -1.000000e+00 : f32
      %87 = vector.broadcast %cst_62 : f32 to vector<1x1x1xf32>
      %c0_63 = arith.constant 0 : index
      %c0_64 = arith.constant 0 : index
      %c0_65 = arith.constant 0 : index
      %88 = vector.load %arg6[%c0_63, %c0_64, %c0_65] : memref<1x1x1xf32, #tpu.memory_space<vmem>>, vector<1x1x1xf32>
      tpu.vector_store %arg6[%c0_63, %c0_64, %c0_65], %87 {strides = array<i32>} : memref<1x1x1xf32, #tpu.memory_space<vmem>>, vector<1x1x1xf32>,
      %cst_66 = arith.constant 1.024000e+03 : f32
      %89 = vector.broadcast %cst_66 : f32 to vector<1x1x1xf32>
      %c0_67 = arith.constant 0 : index
      %c0_68 = arith.constant 0 : index
      %c0_69 = arith.constant 0 : index
      %90 = vector.load %arg7[%c0_67, %c0_68, %c0_69] : memref<1x1x1xf32, #tpu.memory_space<vmem>>, vector<1x1x1xf32>
      tpu.vector_store %arg7[%c0_67, %c0_68, %c0_69], %89 {strides = array<i32>} : memref<1x1x1xf32, #tpu.memory_space<vmem>>, vector<1x1x1xf32>,
      %cst_70 = arith.constant -1.000000e+00 : f32
      %91 = vector.broadcast %cst_70 : f32 to vector<1x1x1xf32>
      %c0_71 = arith.constant 0 : index
      %c0_72 = arith.constant 0 : index
      %c0_73 = arith.constant 0 : index
      %92 = vector.load %arg8[%c0_71, %c0_72, %c0_73] : memref<1x1x1xf32, #tpu.memory_space<vmem>>, vector<1x1x1xf32>
      tpu.vector_store %arg8[%c0_71, %c0_72, %c0_73], %91 {strides = array<i32>} : memref<1x1x1xf32, #tpu.memory_space<vmem>>, vector<1x1x1xf32>,
      %cst_74 = arith.constant 1.024000e+03 : f32
      %93 = vector.broadcast %cst_74 : f32 to vector<1x1x1xf32>
      %c0_75 = arith.constant 0 : index
      %c0_76 = arith.constant 0 : index
      %c0_77 = arith.constant 0 : index
      %94 = vector.load %arg9[%c0_75, %c0_76, %c0_77] : memref<1x1x1xf32, #tpu.memory_space<vmem>>, vector<1x1x1xf32>
      tpu.vector_store %arg9[%c0_75, %c0_76, %c0_77], %93 {strides = array<i32>} : memref<1x1x1xf32, #tpu.memory_space<vmem>>, vector<1x1x1xf32>,
    } else {
    }
    %c0 = arith.constant 0 : index
    %c0_1 = arith.constant 0 : index
    %3 = vector.load %arg2[%c0, %c0_1] : memref<16x1024xf32, #tpu.memory_space<vmem>>, vector<16x1024xf32>
    %4 = arith.negf %3 : vector<16x1024xf32>
    %5 = math.exp %4 : vector<16x1024xf32>
    %cst = arith.constant 1.000000e+00 : f32
    %6 = vector.broadcast %cst : f32 to vector<16x1024xf32>
    %7 = arith.addf %6, %5 : vector<16x1024xf32>
    %8 = arith.divf %6, %7 : vector<16x1024xf32>
    %c0_2 = arith.constant 0 : index
    %c0_3 = arith.constant 0 : index
    %9 = vector.load %arg3[%c0_2, %c0_3] : memref<16x1024xf32, #tpu.memory_space<vmem>>, vector<16x1024xf32>
    %c1_i32 = arith.constant 1 : i32
    %10 = arith.muli %arg0, %c1_i32 : i32
    %11 = arith.addi %10, %arg1 : i32
    %12 = tpu.iota {dimensions = array<i32: 1>} : vector<1x1024xi32>
    %c1024_i32 = arith.constant 1024 : i32
    %13 = arith.muli %11, %c1024_i32 : i32
    %14 = vector.broadcast %13 : i32 to vector<1x1024xi32>
    %15 = arith.addi %12, %14 : vector<1x1024xi32>
    %16 = arith.sitofp %15 : vector<1x1024xi32> to vector<1x1024xf32>
    %c0_4 = arith.constant 0 : index
    %c0_5 = arith.constant 0 : index
    %c0_6 = arith.constant 0 : index
    %17 = vector.load %arg4[%c0_4, %c0_5, %c0_6] : memref<1x16x1xf32, #tpu.memory_space<vmem>>, vector<1x16x1xf32>
    %18 = arith.mulf %8, %9 : vector<16x1024xf32>
    %cst_7 = arith.constant dense<0.000000e+00> : vector<16xf32>
    %19 = vector.multi_reduction <add>, %18, %cst_7 [1] : vector<16x1024xf32> to vector<16xf32>
    %20 = vector.shape_cast %19 : vector<16xf32> to vector<16x1xf32>
    %21 = vector.shape_cast %20 : vector<16x1xf32> to vector<1x16x1xf32>
    %22 = arith.addf %17, %21 : vector<1x16x1xf32>
    %c0_8 = arith.constant 0 : index
    %c0_9 = arith.constant 0 : index
    %c0_10 = arith.constant 0 : index
    %23 = vector.load %arg4[%c0_8, %c0_9, %c0_10] : memref<1x16x1xf32, #tpu.memory_space<vmem>>, vector<1x16x1xf32>
    tpu.vector_store %arg4[%c0_8, %c0_9, %c0_10], %22 {strides = array<i32>} : memref<1x16x1xf32, #tpu.memory_space<vmem>>, vector<1x16x1xf32>,
    %c0_11 = arith.constant 0 : index
    %c0_12 = arith.constant 0 : index
    %c0_13 = arith.constant 0 : index
    %24 = vector.load %arg5[%c0_11, %c0_12, %c0_13] : memref<1x16x1xf32, #tpu.memory_space<vmem>>, vector<1x16x1xf32>
    %25 = arith.addf %8, %9 : vector<16x1024xf32>
    %cst_14 = arith.constant dense<0.000000e+00> : vector<16xf32>
    %26 = vector.multi_reduction <add>, %25, %cst_14 [1] : vector<16x1024xf32> to vector<16xf32>
    %27 = vector.shape_cast %26 : vector<16xf32> to vector<16x1xf32>
    %28 = vector.shape_cast %27 : vector<16x1xf32> to vector<1x16x1xf32>
    %29 = arith.addf %24, %28 : vector<1x16x1xf32>
    %c0_15 = arith.constant 0 : index
    %c0_16 = arith.constant 0 : index
    %c0_17 = arith.constant 0 : index
    %30 = vector.load %arg5[%c0_15, %c0_16, %c0_17] : memref<1x16x1xf32, #tpu.memory_space<vmem>>, vector<1x16x1xf32>
    tpu.vector_store %arg5[%c0_15, %c0_16, %c0_17], %29 {strides = array<i32>} : memref<1x16x1xf32, #tpu.memory_space<vmem>>, vector<1x16x1xf32>,
    %cst_18 = arith.constant dense<0xFF800000> : vector<1024xf32>
    %31 = vector.multi_reduction <maximumf>, %8, %cst_18 [0] : vector<16x1024xf32> to vector<1024xf32>
    %32 = vector.shape_cast %31 : vector<1024xf32> to vector<1x1024xf32>
    %cst_19 = arith.constant 0.000000e+00 : f32
    %33 = vector.broadcast %cst_19 : f32 to vector<1x1024xf32>
    %34 = arith.cmpf one, %32, %33 : vector<1x1024xf32>
    %cst_20 = arith.constant dense<0xFF800000> : vector<1024xf32>
    %35 = vector.multi_reduction <maximumf>, %9, %cst_20 [0] : vector<16x1024xf32> to vector<1024xf32>
    %36 = vector.shape_cast %35 : vector<1024xf32> to vector<1x1024xf32>
    %cst_21 = arith.constant 0.000000e+00 : f32
    %37 = vector.broadcast %cst_21 : f32 to vector<1x1024xf32>
    %38 = arith.cmpf one, %36, %37 : vector<1x1024xf32>
    %c0_22 = arith.constant 0 : index
    %c0_23 = arith.constant 0 : index
    %c0_24 = arith.constant 0 : index
    %39 = vector.load %arg6[%c0_22, %c0_23, %c0_24] : memref<1x1x1xf32, #tpu.memory_space<vmem>>, vector<1x1x1xf32>
    %cst_25 = arith.constant -1.000000e+00 : f32
    %40 = vector.broadcast %cst_25 : f32 to vector<1x1024xf32>
    %41 = arith.select %34, %16, %40 : vector<1x1024xi1>, vector<1x1024xf32>
    %42 = vector.shape_cast %41 : vector<1x1024xf32> to vector<1x1x1024xf32>
    %cst_26 = arith.constant dense<0xFF800000> : vector<1xf32>
    %43 = vector.multi_reduction <maximumf>, %42, %cst_26 [1, 2] : vector<1x1x1024xf32> to vector<1xf32>
    %44 = vector.shape_cast %43 : vector<1xf32> to vector<1x1x1xf32>
    %45 = vector.extract %44[0, 0, 0] : f32 from vector<1x1x1xf32>
    %46 = vector.broadcast %45 : f32 to vector<1x1xf32>
    %47 = vector.shape_cast %46 : vector<1x1xf32> to vector<1x1x1xf32>
    %48 = arith.maximumf %39, %47 : vector<1x1x1xf32>
    %c0_27 = arith.constant 0 : index
    %c0_28 = arith.constant 0 : index
    %c0_29 = arith.constant 0 : index
    %49 = vector.load %arg6[%c0_27, %c0_28, %c0_29] : memref<1x1x1xf32, #tpu.memory_space<vmem>>, vector<1x1x1xf32>
    tpu.vector_store %arg6[%c0_27, %c0_28, %c0_29], %48 {strides = array<i32>} : memref<1x1x1xf32, #tpu.memory_space<vmem>>, vector<1x1x1xf32>,
    %c0_30 = arith.constant 0 : index
    %c0_31 = arith.constant 0 : index
    %c0_32 = arith.constant 0 : index
    %50 = vector.load %arg7[%c0_30, %c0_31, %c0_32] : memref<1x1x1xf32, #tpu.memory_space<vmem>>, vector<1x1x1xf32>
    %cst_33 = arith.constant 1.024000e+03 : f32
    %51 = vector.broadcast %cst_33 : f32 to vector<1x1024xf32>
    %52 = arith.select %34, %16, %51 : vector<1x1024xi1>, vector<1x1024xf32>
    %53 = vector.shape_cast %52 : vector<1x1024xf32> to vector<1x1x1024xf32>
    %cst_34 = arith.constant dense<0x7F800000> : vector<1xf32>
    %54 = vector.multi_reduction <minimumf>, %53, %cst_34 [1, 2] : vector<1x1x1024xf32> to vector<1xf32>
    %55 = vector.shape_cast %54 : vector<1xf32> to vector<1x1x1xf32>
    %56 = vector.extract %55[0, 0, 0] : f32 from vector<1x1x1xf32>
    %57 = vector.broadcast %56 : f32 to vector<1x1xf32>
    %58 = vector.shape_cast %57 : vector<1x1xf32> to vector<1x1x1xf32>
    %59 = arith.minimumf %50, %58 : vector<1x1x1xf32>
    %c0_35 = arith.constant 0 : index
    %c0_36 = arith.constant 0 : index
    %c0_37 = arith.constant 0 : index
    %60 = vector.load %arg7[%c0_35, %c0_36, %c0_37] : memref<1x1x1xf32, #tpu.memory_space<vmem>>, vector<1x1x1xf32>
    tpu.vector_store %arg7[%c0_35, %c0_36, %c0_37], %59 {strides = array<i32>} : memref<1x1x1xf32, #tpu.memory_space<vmem>>, vector<1x1x1xf32>,
    %c0_38 = arith.constant 0 : index
    %c0_39 = arith.constant 0 : index
    %c0_40 = arith.constant 0 : index
    %61 = vector.load %arg8[%c0_38, %c0_39, %c0_40] : memref<1x1x1xf32, #tpu.memory_space<vmem>>, vector<1x1x1xf32>
    %cst_41 = arith.constant -1.000000e+00 : f32
    %62 = vector.broadcast %cst_41 : f32 to vector<1x1024xf32>
    %63 = arith.select %38, %16, %62 : vector<1x1024xi1>, vector<1x1024xf32>
    %64 = vector.shape_cast %63 : vector<1x1024xf32> to vector<1x1x1024xf32>
    %cst_42 = arith.constant dense<0xFF800000> : vector<1xf32>
    %65 = vector.multi_reduction <maximumf>, %64, %cst_42 [1, 2] : vector<1x1x1024xf32> to vector<1xf32>
    %66 = vector.shape_cast %65 : vector<1xf32> to vector<1x1x1xf32>
    %67 = vector.extract %66[0, 0, 0] : f32 from vector<1x1x1xf32>
    %68 = vector.broadcast %67 : f32 to vector<1x1xf32>
    %69 = vector.shape_cast %68 : vector<1x1xf32> to vector<1x1x1xf32>
    %70 = arith.maximumf %61, %69 : vector<1x1x1xf32>
    %c0_43 = arith.constant 0 : index
    %c0_44 = arith.constant 0 : index
    %c0_45 = arith.constant 0 : index
    %71 = vector.load %arg8[%c0_43, %c0_44, %c0_45] : memref<1x1x1xf32, #tpu.memory_space<vmem>>, vector<1x1x1xf32>
    tpu.vector_store %arg8[%c0_43, %c0_44, %c0_45], %70 {strides = array<i32>} : memref<1x1x1xf32, #tpu.memory_space<vmem>>, vector<1x1x1xf32>,
    %c0_46 = arith.constant 0 : index
    %c0_47 = arith.constant 0 : index
    %c0_48 = arith.constant 0 : index
    %72 = vector.load %arg9[%c0_46, %c0_47, %c0_48] : memref<1x1x1xf32, #tpu.memory_space<vmem>>, vector<1x1x1xf32>
    %cst_49 = arith.constant 1.024000e+03 : f32
    %73 = vector.broadcast %cst_49 : f32 to vector<1x1024xf32>
    %74 = arith.select %38, %16, %73 : vector<1x1024xi1>, vector<1x1024xf32>
    %75 = vector.shape_cast %74 : vector<1x1024xf32> to vector<1x1x1024xf32>
    %cst_50 = arith.constant dense<0x7F800000> : vector<1xf32>
    %76 = vector.multi_reduction <minimumf>, %75, %cst_50 [1, 2] : vector<1x1x1024xf32> to vector<1xf32>
    %77 = vector.shape_cast %76 : vector<1xf32> to vector<1x1x1xf32>
    %78 = vector.extract %77[0, 0, 0] : f32 from vector<1x1x1xf32>
    %79 = vector.broadcast %78 : f32 to vector<1x1xf32>
    %80 = vector.shape_cast %79 : vector<1x1xf32> to vector<1x1x1xf32>
    %81 = arith.minimumf %72, %80 : vector<1x1x1xf32>
    %c0_51 = arith.constant 0 : index
    %c0_52 = arith.constant 0 : index
    %c0_53 = arith.constant 0 : index
    %82 = vector.load %arg9[%c0_51, %c0_52, %c0_53] : memref<1x1x1xf32, #tpu.memory_space<vmem>>, vector<1x1x1xf32>
    tpu.vector_store %arg9[%c0_51, %c0_52, %c0_53], %81 {strides = array<i32>} : memref<1x1x1xf32, #tpu.memory_space<vmem>>, vector<1x1x1xf32>,
    return
  }
  func.func @transform_0(%arg0: i32, %arg1: i32) -> (i32, i32) {
    %c1_i32 = arith.constant 1 : i32
    %0 = arith.muli %arg0, %c1_i32 : i32
    %1 = arith.addi %0, %arg1 : i32
    %c0_i32 = arith.constant 0 : i32
    %c0_i32_0 = arith.constant 0 : i32
    return %c0_i32, %1 : i32, i32
  }
  func.func @transform_1(%arg0: i32, %arg1: i32) -> (i32, i32) {
    %c1_i32 = arith.constant 1 : i32
    %0 = arith.muli %arg0, %c1_i32 : i32
    %1 = arith.addi %0, %arg1 : i32
    %c0_i32 = arith.constant 0 : i32
    %c0_i32_0 = arith.constant 0 : i32
    return %c0_i32, %1 : i32, i32
  }
  func.func @transform_2(%arg0: i32, %arg1: i32) -> (i32, i32, i32) {
    %c0_i32 = arith.constant 0 : i32
    %c0_i32_0 = arith.constant 0 : i32
    %c0_i32_1 = arith.constant 0 : i32
    return %arg0, %c0_i32, %c0_i32_0 : i32, i32, i32
  }
  func.func @transform_3(%arg0: i32, %arg1: i32) -> (i32, i32, i32) {
    %c0_i32 = arith.constant 0 : i32
    %c0_i32_0 = arith.constant 0 : i32
    %c0_i32_1 = arith.constant 0 : i32
    return %arg0, %c0_i32, %c0_i32_0 : i32, i32, i32
  }
  func.func @transform_4(%arg0: i32, %arg1: i32) -> (i32, i32, i32) {
    %c0_i32 = arith.constant 0 : i32
    %c0_i32_0 = arith.constant 0 : i32
    %c0_i32_1 = arith.constant 0 : i32
    return %arg0, %c0_i32, %c0_i32_0 : i32, i32, i32
  }
  func.func @transform_5(%arg0: i32, %arg1: i32) -> (i32, i32, i32) {
    %c0_i32 = arith.constant 0 : i32
    %c0_i32_0 = arith.constant 0 : i32
    %c0_i32_1 = arith.constant 0 : i32
    return %arg0, %c0_i32, %c0_i32_0 : i32, i32, i32
  }
  func.func @transform_6(%arg0: i32, %arg1: i32) -> (i32, i32, i32) {
    %c0_i32 = arith.constant 0 : i32
    %c0_i32_0 = arith.constant 0 : i32
    %c0_i32_1 = arith.constant 0 : i32
    return %arg0, %c0_i32, %c0_i32_0 : i32, i32, i32
  }
  func.func @transform_7(%arg0: i32, %arg1: i32) -> (i32, i32, i32) {
    %c0_i32 = arith.constant 0 : i32
    %c0_i32_0 = arith.constant 0 : i32
    %c0_i32_1 = arith.constant 0 : i32
    return %arg0, %c0_i32, %c0_i32_0 : i32, i32, i32
  }
}

</mosaic_0001>

<bundles_post_ra>
// kernel: tpu_custom_call.1
= control target key start
LH: loop header
LB: loop body
LE: loop exit
PB: predicated region body
PF: predicated region fallthrough
CT: control target
= control target key end

     0   :  { %13 = vsyncpa [#allocation3], 0  ;;  %s1889_s0 = inlined_call_operand.hbm [shape: f32[16,1024], index: 0, kind: input, shape index: {}]   ;;  %s1890_s1 = inlined_call_operand.hbm [shape: f32[16,1024], index: 1, kind: input, shape index: {}]   ;;  %s1891_s2 = inlined_call_operand.vmem [shape: f32[1,16,1], index: 2, kind: output, shape index: {0}]   ;;  %s1892_s3 = inlined_call_operand.vmem [shape: f32[1,16,1], index: 3, kind: output, shape index: {1}]   ;;  %s1893_s4 = inlined_call_operand.hbm [shape: f32[1,1,1], index: 4, kind: output, shape index: {2}]   ;;  %s1894_s5 = inlined_call_operand.hbm [shape: f32[1,1,1], index: 5, kind: output, shape index: {3}]   ;;  %s1895_s6 = inlined_call_operand.hbm [shape: f32[1,1,1], index: 6, kind: output, shape index: {4}]   ;;  %s1896_s7 = inlined_call_operand.hbm [shape: f32[1,1,1], index: 7, kind: output, shape index: {5}]  }
   0x1   :  { %14 = vsyncpa [#allocation6], 0 }
   0x2   :  { %15 = vsyncpa [#allocation4], 0 }
   0x3   :  { %16 = vsyncpa [#allocation9], 0 }
   0x4   :  { %17 = vsyncpa [#allocation12], 0  ;;  %s26_s26 = sshll.u32 %s1889_s0, 4  ;;  %s1066_s27 = smov [#allocation2]   ;;  %s27_s26 = int_to_ptr.hbm [resolvable:$true] %s26_s26 }
   0x5   :  { %s28_s28 = sshll.u32 %s1066_s27, 4  ;;  %s43_s8 = sshll.u32 %s1890_s1, 4  ;;  %s29_s28 = int_to_ptr.vmem [resolvable:$true] %s28_s28  ;;  %s44_s8 = int_to_ptr.hbm [resolvable:$true] %s43_s8 }
   0x6   :  { %s1067_s9 = smov 1024   ;;  %s1068_s10 = smov 64  }
   0x7   :  { %34 = dma.hbm_to_vmem [thread:$0]  %s27_s26, 2048, %s29_s28, [#allocation3], %s1067_s9, %s1067_s9, %s1068_s10  }
   0x8   :  { %s1069_s11 = smov [#allocation5]  }
   0x9   :  { %s45_s12 = sshll.u32 %s1069_s11, 4  ;;  %s46_s12 = int_to_ptr.vmem [resolvable:$true] %s45_s12 }
   0xa   :  { %51 = dma.hbm_to_vmem [thread:$0]  %s44_s8, 2048, %s46_s12, [#allocation6], %s1067_s9, %s1067_s9, %s1068_s10  }
   0xb   :  { %1056 = dma.done.wait [#allocation3], 2048  }
   0xc   :  { %1057 = vsyncadd [#allocation3], 4294965248 }
   0xd   :  { %1058 = dma.done.wait [#allocation6], 2048  }
   0xe   :  { %1059 = vsyncadd [#allocation6], 4294965248  ;;  %v78_v0 = vld [vmem:[#allocation2] sm:$0xff]  ;;  %v79_v1 = vld [vmem:[#allocation2 + $0x8] sm:$0xff]  ;;  %s1073_s23 = smov [#allocation7]   ;;  %s751_s27 = sshll.u32 %s1893_s4, 4  ;;  %s752_s27 = int_to_ptr.hbm [resolvable:$true] %s751_s27 }
   0xf   :  { %v80_v2 = vld [vmem:[#allocation2 + $0x10] sm:$0xff]  ;;  %v81_v3 = vld [vmem:[#allocation2 + $0x18] sm:$0xff]  ;;  %v813_v4 = vmul.f32 -1.442695, %v78_v0  ;;  %v82_v5 = vld [vmem:[#allocation2 + $0x20] sm:$0xff]  ;;  %s749_s24 = sshll.u32 %s1073_s23, 4  ;;  %s750_s24 = int_to_ptr.vmem [resolvable:$true] %s749_s24 }
  0x10   :  { %v83_v6 = vld [vmem:[#allocation2 + $0x28] sm:$0xff]  ;;  %v814_v7 = vmul.f32 -1.442695, %v79_v1  ;;  %v84_v8 = vld [vmem:[#allocation2 + $0x30] sm:$0xff]  ;;  %v85_v9 = vld [vmem:[#allocation2 + $0x38] sm:$0xff]  ;;  %s1074_s15 = smov [#allocation8]  }
  0x11   :  { %848 = vpow2.f32 %v813_v4  ;;  %v815_v10 = vmul.f32 -1.442695, %v80_v2  ;;  %v86_v11 = vld [vmem:[#allocation2 + $0x40] sm:$0xff]  ;;  %v816_v12 = vmul.f32 -1.442695, %v81_v3  ;;  %v87_v13 = vld [vmem:[#allocation2 + $0x48] sm:$0xff] }
  0x12   :  { %850 = vpow2.f32 %v814_v7  ;;  %v817_v14 = vmul.f32 -1.442695, %v82_v5  ;;  %v818_v15 = vmul.f32 -1.442695, %v83_v6  ;;  %v88_v16 = vld [vmem:[#allocation2 + $0x50] sm:$0xff]  ;;  %v89_v19 = vld [vmem:[#allocation2 + $0x58] sm:$0xff] }
  0x13   :  { %852 = vpow2.f32 %v815_v10  ;;  %v819_v17 = vmul.f32 -1.442695, %v84_v8  ;;  %v820_v18 = vmul.f32 -1.442695, %v85_v9  ;;  %v821_v20 = vmul.f32 -1.442695, %v86_v11 }
  0x14   :  { %854 = vpow2.f32 %v816_v12  ;;  %v90_v21 = vld [vmem:[#allocation2 + $0x60] sm:$0xff]  ;;  %v822_v22 = vmul.f32 -1.442695, %v87_v13  ;;  %v91_v24 = vld [vmem:[#allocation2 + $0x68] sm:$0xff]  ;;  %v823_v25 = vmul.f32 -1.442695, %v88_v16 }
  0x15   :  { %856 = vpow2.f32 %v817_v14  ;;  %v92_v27 = vld [vmem:[#allocation2 + $0x70] sm:$0xff]  ;;  %v824_v28 = vmul.f32 -1.442695, %v89_v19  ;;  %v93_v30 = vld [vmem:[#allocation2 + $0x78] sm:$0xff]  ;;  %v825_v31 = vmul.f32 -1.442695, %v90_v21 }
  0x16   :  { %858 = vpow2.f32 %v818_v15  ;;  %v826_v33 = vmul.f32 -1.442695, %v91_v24  ;;  %v827_v35 = vmul.f32 -1.442695, %v92_v27  ;;  %v828_v37 = vmul.f32 -1.442695, %v93_v30 }
  0x17   :  { %v849_v23 = vpop.eup %848  ;;  %860 = vpow2.f32 %v819_v17  ;;  %s760_s16 = sshll.u32 %s1074_s15, 4  ;;  %s762_s19 = sshll.u32 %s1894_s5, 4  ;;  %s761_s16 = int_to_ptr.vmem [resolvable:$true] %s760_s16  ;;  %s763_s19 = int_to_ptr.hbm [resolvable:$true] %s762_s19 }
  0x18   :  { %v851_v26 = vpop.eup %850  ;;  %862 = vpow2.f32 %v820_v18  ;;  %v1123_v38 = vadd.f32 1.0, %v849_v23  ;;  %s1076_s5 = smov [#allocation11]  }
  0x19   :  { %v853_v29 = vpop.eup %852  ;;  %864 = vpow2.f32 %v821_v20  ;;  %v1125_v40 = vadd.f32 1.0, %v851_v26  ;;  %s782_s25 = sshll.u32 %s1076_s5, 4  ;;  %s783_s25 = int_to_ptr.vmem [resolvable:$true] %s782_s25 }
  0x1a   :  { %v855_v32 = vpop.eup %854  ;;  %866 = vpow2.f32 %v822_v22  ;;  %v169_v42 = vand.u32 2147483648, %v1123_v38  ;;  %v1128_v44 = vadd.f32 1.0, %v853_v29  ;;  %v167_v49 = vand.u32 2147483647, %v1123_v38 }
  0x1b   :  { %v857_v34 = vpop.eup %856  ;;  %868 = vpow2.f32 %v823_v25  ;;  %v184_v45 = vand.u32 2147483648, %v1125_v40  ;;  %v1131_v47 = vadd.f32 1.0, %v855_v32  ;;  %v182_v52 = vand.u32 2147483647, %v1125_v40 }
  0x1c   :  { %v859_v36 = vpop.eup %858  ;;  %870 = vpow2.f32 %v824_v28  ;;  %v1133_v48 = vadd.f32 1.0, %v857_v34  ;;  %v199_v53 = vand.u32 2147483648, %v1128_v44  ;;  %vm163_vm0 = vweird.f32 %v1123_v38 }
  0x1d   :  { %v861_v39 = vpop.eup %860  ;;  %872 = vpow2.f32 %v825_v31  ;;  %v1136_v51 = vadd.f32 1.0, %v859_v36  ;;  %v1146_v57 = vor.u32 1.1754944e-38, %v169_v42  ;;  %vm178_vm1 = vweird.f32 %v1125_v40 }
  0x1e   :  { %v863_v41 = vpop.eup %862  ;;  %874 = vpow2.f32 %v826_v33  ;;  %v1141_v55 = vadd.f32 1.0, %v861_v39  ;;  %v1150_v59 = vor.u32 1.1754944e-38, %v184_v45  ;;  %v197_v60 = vand.u32 2147483647, %v1128_v44 }
  0x1f   :  { %v865_v43 = vpop.eup %864  ;;  %876 = vpow2.f32 %v827_v35  ;;  %v1143_v56 = vadd.f32 1.0, %v863_v41  ;;  %v214_v61 = vand.u32 2147483648, %v1131_v47  ;;  %vm193_vm2 = vweird.f32 %v1128_v44 }
  0x20   :  { %v867_v46 = vpop.eup %866  ;;  %878 = vpow2.f32 %v828_v37  ;;  %v1155_v63 = vadd.f32 1.0, %v865_v43  ;;  %v212_v1 = vand.u32 2147483647, %v1131_v47  ;;  %v1164_v4 = vor.u32 1.1754944e-38, %v199_v53 }
  0x21   :  { %v869_v50 = vpop.eup %868  ;;  %880 = vrcp.f32 %v1123_v38  ;;  %v1157_v0 = vadd.f32 1.0, %v867_v46  ;;  %vm208_vm3 = vweird.f32 %v1131_v47  ;;  %v229_v5 = vand.u32 2147483648, %v1133_v48 }
  0x22   :  { %v871_v54 = vpop.eup %870  ;;  %882 = vrcp.f32 %v1125_v40  ;;  %v1162_v3 = vadd.f32 1.0, %v869_v50  ;;  %v1179_v11 = vor.u32 1.1754944e-38, %v214_v61  ;;  %v227_v12 = vand.u32 2147483647, %v1133_v48 }
  0x23   :  { %v873_v58 = vpop.eup %872  ;;  %884 = vrcp.f32 %v1128_v44  ;;  %v1169_v7 = vadd.f32 1.0, %v871_v54  ;;  %v242_v16 = vand.u32 2147483647, %v1136_v51  ;;  %v1197_v20 = vor.u32 1.1754944e-38, %v229_v5 }
  0x24   :  { %v875_v62 = vpop.eup %874  ;;  %886 = vrcp.f32 %v1131_v47  ;;  %v1171_v8 = vadd.f32 1.0, %v873_v58  ;;  %v244_v21 = vand.u32 2147483648, %v1136_v51  ;;  %vm1203_vm7 = vcmp.eq.f32.partialorder %v167_v49, 8.507059e+37 }
  0x25   :  { %v877_v2 = vpop.eup %876  ;;  %888 = vrcp.f32 %v1133_v48  ;;  %v1177_v10 = vadd.f32 1.0, %v875_v62  ;;  %vm1213_vm10 = vcmp.eq.f32.partialorder %v182_v52, 8.507059e+37  ;;  %vm1221_vm12 = vcmp.eq.f32.partialorder %v197_v60, 8.507059e+37 }
  0x26   :  { %v879_v6 = vpop.eup %878  ;;  %890 = vrcp.f32 %v1136_v51  ;;  %v1185_v14 = vadd.f32 1.0, %v877_v2  ;;  %vm1226_vm14 = vcmp.eq.f32.partialorder %v212_v1, 8.507059e+37  ;;  %vm1232_vm15 = vcmp.eq.f32.partialorder %v227_v12, 8.507059e+37 }
  0x27   :  { %v1175_v9 = vpop.eup %880  ;;  %892 = vrcp.f32 %v1141_v55  ;;  %v1193_v18 = vadd.f32 1.0, %v879_v6  ;;  %v259_v5 = vand.u32 2147483648, %v1141_v55  ;;  %v272_v28 = vand.u32 2147483647, %v1143_v56 }
  0x28   :  { %v1183_v13 = vpop.eup %882  ;;  %v159_v15 = vmul.f32 %v1175_v9, %v1123_v38  ;;  %vm164_vm6 = vweird.f32 %v1175_v9  ;;  %894 = vrcp.f32 %v1143_v56  ;;  %v304_v33 = vand.u32 2147483648, %v1157_v0 }
  0x29   :  { %v1191_v17 = vpop.eup %884  ;;  %v174_v19 = vmul.f32 %v1183_v13, %v1125_v40  ;;  %vm179_vm9 = vweird.f32 %v1183_v13  ;;  %vm1240_vm8 = vmor %vm163_vm0, %vm164_vm6  ;;  %896 = vrcp.f32 %v1155_v63  ;;  %v319_v36 = vand.u32 2147483648, %v1162_v3 }
  0x2a   :  { %v1200_v22 = vpop.eup %886  ;;  %v160_v23 = vsub.f32 1.0, %v159_v15  ;;  %v189_v25 = vmul.f32 %v1191_v17, %v1128_v44  ;;  %vm194_vm11 = vweird.f32 %v1191_v17  ;;  %vm1252_vm4 = vmor %vm178_vm1, %vm179_vm9  ;;  %vm1943_vm9 = vweird.f32 %v1133_v48 }
  0x2b   :  { %v1210_v26 = vpop.eup %888  ;;  %v175_v27 = vsub.f32 1.0, %v174_v19  ;;  %v204_v29 = vmul.f32 %v1200_v22, %v1131_v47  ;;  %vm209_vm13 = vweird.f32 %v1200_v22  ;;  %vm1263_vm0 = vmor %vm193_vm2, %vm194_vm11  ;;  %v257_v47 = vand.u32 2147483647, %v1141_v55 }
  0x2c   :  { %v891_v30 = vpop.eup %890  ;;  %v161_v31 = vmul.f32 %v1175_v9, %v160_v23  ;;  %v190_v32 = vsub.f32 1.0, %v189_v25  ;;  %v219_v35 = vmul.f32 %v1210_v26, %v1133_v48  ;;  %vm224_vm5 = vweird.f32 %v1210_v26  ;;  %vm1273_vm6 = vmor %vm208_vm3, %vm209_vm13 }
  0x2d   :  { %v893_v37 = vpop.eup %892  ;;  %v176_v41 = vmul.f32 %v1183_v13, %v175_v27  ;;  %v205_v42 = vsub.f32 1.0, %v204_v29  ;;  %v234_v43 = vmul.f32 %v891_v30, %v1136_v51  ;;  %vm239_vm1 = vweird.f32 %v891_v30  ;;  %vm1283_vm11 = vmor %vm1943_vm9, %vm224_vm5 }
  0x2e   :  { %v162_v45 = vadd.f32 %v1175_v9, %v161_v31  ;;  %v191_v38 = vmul.f32 %v1191_v17, %v190_v32  ;;  %v220_v49 = vsub.f32 1.0, %v219_v35  ;;  %v249_v50 = vmul.f32 %v893_v37, %v1141_v55 }
  0x2f   :  { %v177_v52 = vadd.f32 %v1183_v13, %v176_v41  ;;  %v206_v40 = vmul.f32 %v1200_v22, %v205_v42  ;;  %v235_v54 = vsub.f32 1.0, %v234_v43  ;;  %vm254_vm2 = vweird.f32 %v893_v37 }
  0x30   :  { %v192_v58 = vadd.f32 %v1191_v17, %v191_v38  ;;  %v221_v44 = vmul.f32 %v1210_v26, %v220_v49  ;;  %v250_v61 = vsub.f32 1.0, %v249_v50  ;;  %v166_v6 = vsel %vm1240_vm8, %v1175_v9, %v162_v45 }
  0x31   :  { %v207_v62 = vadd.f32 %v1200_v22, %v206_v40  ;;  %v236_v2 = vmul.f32 %v891_v30, %v235_v54  ;;  %vm1946_vm3 = vweird.f32 %v1136_v51  ;;  %vm1299_vm5 = vcmp.eq.f32.partialorder %v242_v16, 8.507059e+37 }
  0x32   :  { %v222_v12 = vadd.f32 %v1210_v26, %v221_v44  ;;  %vm1295_vm13 = vmor %vm1946_vm3, %vm239_vm1  ;;  %v251_v19 = vmul.f32 %v893_v37, %v250_v61  ;;  %v181_v23 = vsel %vm1252_vm4, %v1183_v13, %v177_v52  ;;  %v196_v9 = vsel %vm1263_vm0, %v1191_v17, %v192_v58 }
  0x33   :  { %v237_v25 = vadd.f32 %v891_v30, %v236_v2  ;;  %v245_v27 = vor.u32 1.1754944e-38, %v244_v21  ;;  %vm1951_vm8 = vweird.f32 %v1141_v55  ;;  %v211_v16 = vsel %vm1273_vm6, %v1200_v22, %v207_v62 }
  0x34   :  { %vm1312_vm1 = vmor %vm1951_vm8, %vm254_vm2  ;;  %v226_v13 = vsel %vm1283_vm11, %v1210_v26, %v222_v12  ;;  %v252_v29 = vadd.f32 %v893_v37, %v251_v19  ;;  %v1326_v17 = vsel %vm1203_vm7, %v1146_v57, %v166_v6  ;;  %vm258_vm4 = vcmp.eq.f32.partialorder %v257_v47, 8.507059e+37 }
  0x35   :  { %v241_v55 = vsel %vm1295_vm13, %v891_v30, %v237_v25  ;;  %v260_v21 = vor.u32 1.1754944e-38, %v259_v5  ;;  %v1333_v22 = vsel %vm1213_vm10, %v1150_v59, %v181_v23  ;;  %v274_v31 = vand.u32 2147483648, %v1143_v56 }
  0x36   :  { %v256_v26 = vsel %vm1312_vm1, %v893_v37, %v252_v29  ;;  %v1342_v57 = vsel %vm1221_vm12, %v1164_v4, %v196_v9  ;;  %v1347_v24 = vsel %vm1226_vm14, %v1179_v11, %v211_v16  ;;  %v1352_v59 = vsel %vm1232_vm15, %v1197_v20, %v226_v13  ;;  %v1367_v20 = vpop.eup %894 }
  0x37   :  { %v1357_v30 = vsel %vm1299_vm5, %v245_v27, %v241_v55  ;;  %vm268_vm7 = vweird.f32 %v1143_v56  ;;  %v289_v4 = vand.u32 2147483648, %v1155_v63  ;;  %898 = vrcp.f32 %v1157_v0  ;;  %v1382_v43 = vpop.eup %896 }
  0x38   :  { %1954 = vst [vmem:[#allocation18_spill] sm:$0xff] %v1357_v30  ;;  %v1362_v32 = vsel %vm258_vm4, %v260_v21, %v256_v26  ;;  %v287_v11 = vand.u32 2147483647, %v1155_v63  ;;  %900 = vrcp.f32 %v1162_v3  ;;  %v275_v34 = vor.u32 1.1754944e-38, %v274_v31 }
  0x39   :  { %1955 = vst [vmem:[#allocation19_spill] sm:$0xff] %v1362_v32  ;;  %vm283_vm10 = vweird.f32 %v1155_v63  ;;  %v302_v35 = vand.u32 2147483647, %v1157_v0  ;;  %v264_v37 = vmul.f32 %v1367_v20, %v1143_v56  ;;  %vm1374_vm12 = vcmp.eq.f32.partialorder %v272_v28, 8.507059e+37 }
  0x3a   :  { %v1378_v41 = vor.u32 1.1754944e-38, %v289_v4  ;;  %vm298_vm14 = vweird.f32 %v1157_v0  ;;  %v317_v42 = vand.u32 2147483647, %v1162_v3  ;;  %vm269_vm15 = vweird.f32 %v1367_v20 }
  0x3b   :  { %v1385_v45 = vor.u32 1.1754944e-38, %v304_v33  ;;  %vm313_vm0 = vweird.f32 %v1162_v3  ;;  %902 = vrcp.f32 %v1169_v7  ;;  %v265_v46 = vsub.f32 1.0, %v264_v37  ;;  %vm1417_vm5 = vmor %vm268_vm7, %vm269_vm15 }
  0x3c   :  { %v279_v38 = vmul.f32 %v1382_v43, %v1155_v63  ;;  %vm1391_vm6 = vcmp.eq.f32.partialorder %v287_v11, 8.507059e+37  ;;  %v1395_v50 = vor.u32 1.1754944e-38, %v319_v36  ;;  %v332_v52 = vand.u32 2147483647, %v1169_v7 }
  0x3d   :  { %v899_v53 = vpop.eup %898  ;;  %vm284_vm2 = vweird.f32 %v1382_v43  ;;  %vm1399_vm9 = vcmp.eq.f32.partialorder %v302_v35, 8.507059e+37  ;;  %vm328_vm11 = vweird.f32 %v1169_v7  ;;  %v334_v54 = vand.u32 2147483648, %v1169_v7 }
  0x3e   :  { %904 = vrcp.f32 %v1171_v8  ;;  %v901_v58 = vpop.eup %900  ;;  %v266_v60 = vmul.f32 %v1367_v20, %v265_v46  ;;  %v280_v44 = vsub.f32 1.0, %v279_v38  ;;  %v294_v61 = vmul.f32 %v899_v53, %v1157_v0  ;;  %vm1433_vm7 = vmor %vm283_vm10, %vm284_vm2 }
  0x3f   :  { %vm1408_vm3 = vcmp.eq.f32.partialorder %v317_v42, 8.507059e+37  ;;  %vm343_vm13 = vweird.f32 %v1171_v8  ;;  %vm299_vm8 = vweird.f32 %v899_v53  ;;  %v309_v2 = vmul.f32 %v901_v58, %v1162_v3 }
  0x40   :  { %vm314_vm1 = vweird.f32 %v901_v58  ;;  %v347_v47 = vand.u32 2147483647, %v1171_v8  ;;  %v267_v5 = vadd.f32 %v1367_v20, %v266_v60  ;;  %v281_v6 = vmul.f32 %v1382_v43, %v280_v44  ;;  %vm1447_vm10 = vmor %vm298_vm14, %vm299_vm8 }
  0x41   :  { %v295_v12 = vsub.f32 1.0, %v294_v61  ;;  %vm1425_vm4 = vcmp.eq.f32.partialorder %v332_v52, 8.507059e+37  ;;  %v903_v56 = vpop.eup %902  ;;  %v310_v19 = vsub.f32 1.0, %v309_v2  ;;  %v335_v23 = vor.u32 1.1754944e-38, %v334_v54  ;;  %vm1462_vm14 = vmor %vm313_vm0, %vm314_vm1 }
  0x42   :  { %v349_v9 = vand.u32 2147483648, %v1171_v8  ;;  %906 = vrcp.f32 %v1177_v10  ;;  %v271_v25 = vsel %vm1417_vm5, %v1367_v20, %v267_v5  ;;  %v282_v27 = vadd.f32 %v1382_v43, %v281_v6 }
  0x43   :  { %v296_v51 = vmul.f32 %v899_v53, %v295_v12  ;;  %v324_v16 = vmul.f32 %v903_v56, %v1169_v7  ;;  %v311_v29 = vmul.f32 %v901_v58, %v310_v19  ;;  %vm329_vm15 = vweird.f32 %v903_v56 }
  0x44   :  { %v905_v63 = vpop.eup %904  ;;  %vm1451_vm2 = vcmp.eq.f32.partialorder %v347_v47, 8.507059e+37  ;;  %vm358_vm5 = vweird.f32 %v1177_v10  ;;  %v286_v21 = vsel %vm1433_vm7, %v1382_v43, %v282_v27  ;;  %v1469_v4 = vsel %vm1374_vm12, %v275_v34, %v271_v25  ;;  %vm1484_vm12 = vmor %vm328_vm11, %vm329_vm15 }
  0x45   :  { %v297_v26 = vadd.f32 %v899_v53, %v296_v51  ;;  %v325_v31 = vsub.f32 1.0, %v324_v16  ;;  %v339_v28 = vmul.f32 %v905_v63, %v1171_v8  ;;  %1976 = vst [vmem:[#allocation20_spill] sm:$0xff] %v1469_v4  ;;  %v312_v11 = vadd.f32 %v901_v58, %v311_v29 }
  0x46   :  { %v350_v33 = vor.u32 1.1754944e-38, %v349_v9  ;;  %v362_v20 = vand.u32 2147483647, %v1177_v10  ;;  %vm344_vm0 = vweird.f32 %v905_v63  ;;  %v1477_v42 = vsel %vm1391_vm6, %v1378_v41, %v286_v21 }
  0x47   :  { %v301_v35 = vsel %vm1447_vm10, %v899_v53, %v297_v26  ;;  %v326_v36 = vmul.f32 %v903_v56, %v325_v31  ;;  %v340_v3 = vsub.f32 1.0, %v339_v28  ;;  %v316_v34 = vsel %vm1462_vm14, %v901_v58, %v312_v11  ;;  %vm1503_vm6 = vmor %vm343_vm13, %vm344_vm0 }
  0x48   :  { %v907_v37 = vpop.eup %906  ;;  %v364_v43 = vand.u32 2147483648, %v1177_v10  ;;  %908 = vrcp.f32 %v1185_v14  ;;  %v1493_v46 = vsel %vm1399_vm9, %v1385_v45, %v301_v35  ;;  %v1499_v7 = vsel %vm1408_vm3, %v1395_v50, %v316_v34 }
  0x49   :  { %v327_v41 = vadd.f32 %v903_v56, %v326_v36  ;;  %v341_v38 = vmul.f32 %v905_v63, %v340_v3  ;;  %v354_v49 = vmul.f32 %v907_v37, %v1177_v10  ;;  %vm359_vm11 = vweird.f32 %v907_v37 }
  0x4a   :  { %vm1507_vm8 = vcmp.eq.f32.partialorder %v362_v20, 8.507059e+37  ;;  %v377_v45 = vand.u32 2147483647, %v1185_v14  ;;  %v379_v50 = vand.u32 2147483648, %v1185_v14  ;;  %v365_v60 = vor.u32 1.1754944e-38, %v364_v43  ;;  %vm1532_vm1 = vmor %vm358_vm5, %vm359_vm11 }
  0x4b   :  { %v331_v40 = vsel %vm1484_vm12, %v903_v56, %v327_v41  ;;  %v342_v54 = vadd.f32 %v905_v63, %v341_v38  ;;  %v355_v58 = vsub.f32 1.0, %v354_v49  ;;  %vm373_vm9 = vweird.f32 %v1185_v14 }
  0x4c   :  { %v1517_v8 = vsel %vm1425_vm4, %v335_v23, %v331_v40  ;;  %910 = vrcp.f32 %v1193_v18  ;;  %vm1523_vm3 = vcmp.eq.f32.partialorder %v377_v45, 8.507059e+37  ;;  %vm388_vm13 = vweird.f32 %v1193_v18 }
  0x4d   :  { %1983 = vst [vmem:[#allocation21_spill] sm:$0xff] %v1517_v8  ;;  %v346_v44 = vsel %vm1503_vm6, %v905_v63, %v342_v54  ;;  %v356_v61 = vmul.f32 %v907_v37, %v355_v58  ;;  %v392_v1 = vand.u32 2147483647, %v1193_v18  ;;  %v380_v5 = vor.u32 1.1754944e-38, %v379_v50 }
  0x4e   :  { %v909_v2 = vpop.eup %908  ;;  %v394_v6 = vand.u32 2147483648, %v1193_v18  ;;  %v415_v12 = vlaneseq  ;;  %v523_v15 = vmax.f32 %v1326_v17, %v1477_v42  ;;  %v1541_v56 = vsel %vm1451_vm2, %v350_v33, %v346_v44 }
  0x4f   :  { %1988 = vst [vmem:[#allocation22_spill] sm:$0xff] %v1541_v56  ;;  %v357_v48 = vadd.f32 %v907_v37, %v356_v61  ;;  %v369_v19 = vmul.f32 %v909_v2, %v1185_v14  ;;  %vm374_vm4 = vweird.f32 %v909_v2  ;;  %v530_v25 = vmax.f32 %v1333_v22, %v1493_v46 }
  0x50   :  { %v395_v10 = vor.u32 1.1754944e-38, %v394_v6  ;;  %v416_v23 = vand.u32 127, %v415_v12  ;;  %v524_v9 = vrot.slane %v523_v15, 4  ;;  %vm1548_vm7 = vcmp.eq.f32.partialorder %v392_v1, 8.507059e+37  ;;  %vm1564_vm15 = vmor %vm373_vm9, %vm374_vm4 }
  0x51   :  { %v361_v27 = vsel %vm1532_vm1, %v907_v37, %v357_v48  ;;  %v370_v51 = vsub.f32 1.0, %v369_v19  ;;  %v537_v63 = vmax.f32 %v1342_v57, %v1499_v7  ;;  %v544_v13 = vmax.f32 %v1347_v24, %v1517_v8  ;;  %v1703_v8 = vld [vmem:[#allocation5 + $0x78] sm:$0xff] }
  0x52   :  { %v911_v29 = vpop.eup %910  ;;  %v1558_v55 = vsel %vm1507_vm8, %v365_v60, %v361_v27  ;;  %v417_v21 = vadd.s32 128, %v416_v23  ;;  %v418_v26 = vadd.s32 256, %v416_v23  ;;  %v419_v0 = vadd.s32 384, %v416_v23 }
  0x53   :  { %1991 = vst [vmem:[#allocation23_spill] sm:$0xff] %v1558_v55  ;;  %v371_v31 = vmul.f32 %v909_v2, %v370_v51  ;;  %v384_v28 = vmul.f32 %v911_v29, %v1193_v18  ;;  %vm389_vm10 = vweird.f32 %v911_v29  ;;  %v420_v11 = vadd.s32 512, %v416_v23 }
  0x54   :  { %v421_v20 = vadd.s32 640, %v416_v23  ;;  %v422_v35 = vadd.s32 768, %v416_v23  ;;  %v423_v36 = vadd.s32 896, %v416_v23  ;;  %v1568_v3 = vcvt.s32.f32 %v416_v23  ;;  %vm1593_vm2 = vmor %vm388_vm13, %vm389_vm10 }
  0x55   :  { %v372_v37 = vadd.f32 %v909_v2, %v371_v31  ;;  %v385_v34 = vsub.f32 1.0, %v384_v28  ;;  %v1570_v39 = vcvt.s32.f32 %v417_v21  ;;  %v1572_v43 = vcvt.s32.f32 %v418_v26 }
  0x56   :  { %v1574_v41 = vcvt.s32.f32 %v419_v0  ;;  %v1576_v38 = vcvt.s32.f32 %v420_v11  ;;  %v1578_v14 = vcvt.s32.f32 %v421_v20  ;;  %v1580_v49 = vcvt.s32.f32 %v422_v35 }
  0x57   :  { %v376_v52 = vsel %vm1564_vm15, %v909_v2, %v372_v37  ;;  %v386_v53 = vmul.f32 %v911_v29, %v385_v34  ;;  %v1584_v45 = vcvt.s32.f32 %v423_v36  ;;  %v525_v40 = vmax.f32 %v523_v15, %v524_v9 }
  0x58   :  { %v1588_v54 = vsel %vm1523_vm3, %v380_v5, %v376_v52  ;;  %v531_v50 = vrot.slane %v530_v25, 4  ;;  %v538_v60 = vrot.slane %v537_v63, 4  ;;  %v545_v44 = vrot.slane %v544_v13, 4 }
  0x59   :  { %1994 = vst [vmem:[#allocation24_spill] sm:$0xff] %v1588_v54  ;;  %v387_v61 = vadd.f32 %v911_v29, %v386_v53  ;;  %v526_v1 = vrot.slane %v525_v40, 2  ;;  %v551_v2 = vmax.f32 %v1352_v59, %v1541_v56  ;;  %v558_v62 = vmax.f32 %v1357_v30, %v1558_v55 }
  0x5a   :  { %v532_v47 = vmax.f32 %v530_v25, %v531_v50  ;;  %v539_v5 = vmax.f32 %v537_v63, %v538_v60  ;;  %v546_v6 = vmax.f32 %v544_v13, %v545_v44  ;;  %v565_v18 = vmax.f32 %v1362_v32, %v1588_v54 }
  0x5b   :  { %v391_v12 = vsel %vm1593_vm2, %v911_v29, %v387_v61  ;;  %v527_v15 = vmax.f32 %v525_v40, %v526_v1  ;;  %v552_v48 = vrot.slane %v551_v2, 4  ;;  %v559_v19 = vrot.slane %v558_v62, 4 }
  0x5c   :  { %v1607_v23 = vsel %vm1548_vm7, %v395_v10, %v391_v12  ;;  %v533_v9 = vrot.slane %v532_v47, 2  ;;  %v540_v27 = vrot.slane %v539_v5, 2  ;;  %v547_v51 = vrot.slane %v546_v6, 2 }
  0x5d   :  { %1997 = vst [vmem:[#allocation25_spill] sm:$0xff] %v1607_v23  ;;  %v528_v21 = vrot.slane %v527_v15, 1  ;;  %v553_v25 = vmax.f32 %v551_v2, %v552_v48  ;;  %v560_v63 = vmax.f32 %v558_v62, %v559_v19  ;;  %v566_v13 = vrot.slane %v565_v18, 4  ;;  %v1623_v2 = vld [vmem:[#allocation5] sm:$0xff] }
  0x5e   :  { %v534_v26 = vmax.f32 %v532_v47, %v533_v9  ;;  %v541_v0 = vmax.f32 %v539_v5, %v540_v27  ;;  %v548_v31 = vmax.f32 %v546_v6, %v547_v51  ;;  %v572_v29 = vmax.f32 %v1469_v4, %v1607_v23  ;;  %v1625_v62 = vld [vmem:[#allocation5 + $0x40] sm:$0xff]  ;;  %v1630_v5 = vld [vmem:[#allocation5 + $0x8] sm:$0xff] }
  0x5f   :  { %v1611_v28 = vmax.f32 %v527_v15, %v528_v21  ;;  %v554_v11 = vrot.slane %v553_v25, 2  ;;  %v561_v33 = vrot.slane %v560_v63, 2  ;;  %v567_v16 = vmax.f32 %v565_v18, %v566_v13  ;;  %v1632_v6 = vld [vmem:[#allocation5 + $0x48] sm:$0xff] }
  0x60   :  { %v535_v10 = vrot.slane %v534_v26, 1  ;;  %v542_v20 = vrot.slane %v541_v0, 1  ;;  %v549_v35 = vrot.slane %v548_v31, 1  ;;  %v573_v36 = vrot.slane %v572_v29, 4 }
  0x61   :  { %v555_v37 = vmax.f32 %v553_v25, %v554_v11  ;;  %v562_v34 = vmax.f32 %v560_v63, %v561_v33  ;;  %v568_v52 = vrot.slane %v567_v16, 2  ;;  %vm579_vm5 = vcmp.ne.f32.partialorder %v1611_v28, 0.0  ;;  %v1653_v25 = vld [vmem:[#allocation5 + $0x10] sm:$0xff]  ;;  %v1667_v11 = vld [vmem:[#allocation5 + $0x58] sm:$0xff] }
  0x62   :  { %v1614_v53 = vmax.f32 %v534_v26, %v535_v10  ;;  %v1616_v40 = vmax.f32 %v541_v0, %v542_v20  ;;  %v1618_v58 = vmax.f32 %v548_v31, %v549_v35  ;;  %v574_v50 = vmax.f32 %v572_v29, %v573_v36  ;;  %v1655_v63 = vld [vmem:[#allocation5 + $0x50] sm:$0xff]  ;;  %v1665_v29 = vld [vmem:[#allocation5 + $0x18] sm:$0xff]  ;;  %1998 = vst [vmem:[#allocation26_spill] sm:$0xff] %v1667_v11  ;;  %v1670_v20 = vld [vmem:[#allocation5 + $0x20] sm:$0xff] }
  0x63   :  { %v556_v60 = vrot.slane %v555_v37, 1  ;;  %v563_v44 = vrot.slane %v562_v34, 1  ;;  %v569_v61 = vmax.f32 %v567_v16, %v568_v52  ;;  %v652_v1 = vsel %vm579_vm5, %v1568_v3, -1.0  ;;  %1999 = vst [vmem:[#allocation27_spill] sm:$0xff] %v1670_v20  ;;  %v1672_v35 = vld [vmem:[#allocation5 + $0x60] sm:$0xff]  ;;  %v1679_v52 = vld [vmem:[#allocation5 + $0x28] sm:$0xff] }
  0x64   :  { %v575_v47 = vrot.slane %v574_v50, 2  ;;  %vm580_vm14 = vcmp.ne.f32.partialorder %v1614_v53, 0.0  ;;  %vm581_vm0 = vcmp.ne.f32.partialorder %v1616_v40, 0.0  ;;  %vm582_vm12 = vcmp.ne.f32.partialorder %v1618_v58, 0.0  ;;  %2000 = vst [vmem:[#allocation28_spill] sm:$0xff] %v1672_v35 }
  0x65   :  { %v1634_v18 = vmax.f32 %v555_v37, %v556_v60  ;;  %v1636_v12 = vmax.f32 %v562_v34, %v563_v44  ;;  %v570_v15 = vrot.slane %v569_v61, 1  ;;  %v653_v48 = vsel %vm580_vm14, %v1570_v39, -1.0 }
  0x66   :  { %v576_v19 = vmax.f32 %v574_v50, %v575_v47  ;;  %v654_v9 = vsel %vm581_vm0, %v1572_v43, -1.0  ;;  %v655_v27 = vsel %vm582_vm12, %v1574_v41, -1.0  ;;  %v587_v51 = vmax.f32 %v1623_v2, %v1625_v62  ;;  %v1681_v50 = vld [vmem:[#allocation5 + $0x68] sm:$0xff] }
  0x67   :  { %v1649_v21 = vmax.f32 %v569_v61, %v570_v15  ;;  %vm583_vm6 = vcmp.ne.f32.partialorder %v1634_v18, 0.0  ;;  %vm584_vm11 = vcmp.ne.f32.partialorder %v1636_v12, 0.0  ;;  %v594_v13 = vmax.f32 %v1630_v5, %v1632_v6  ;;  %2001 = vst [vmem:[#allocation29_spill] sm:$0xff] %v1681_v50 }
  0x68   :  { %v577_v26 = vrot.slane %v576_v19, 1  ;;  %v656_v0 = vsel %vm583_vm6, %v1576_v38, -1.0  ;;  %v657_v31 = vsel %vm584_vm11, %v1578_v14, -1.0  ;;  %v588_v33 = vrot.slane %v587_v51, 4 }
  0x69   :  { %vm585_vm8 = vcmp.ne.f32.partialorder %v1649_v21, 0.0  ;;  %v660_v16 = vmax.f32 %v652_v1, %v656_v0  ;;  %v661_v10 = vmax.f32 %v653_v48, %v657_v31  ;;  %v595_v36 = vrot.slane %v594_v13, 4  ;;  %v1688_v48 = vld [vmem:[#allocation5 + $0x30] sm:$0xff] }
  0x6a   :  { %v1674_v37 = vmax.f32 %v576_v19, %v577_v26  ;;  %v658_v34 = vsel %vm585_vm8, %v1580_v49, -1.0  ;;  %v589_v60 = vmax.f32 %v587_v51, %v588_v33  ;;  %v601_v44 = vmax.f32 %v1653_v25, %v1655_v63  ;;  %2002 = vst [vmem:[#allocation30_spill] sm:$0xff] %v1688_v48  ;;  %v1690_v19 = vld [vmem:[#allocation5 + $0x70] sm:$0xff] }
  0x6b   :  { %v662_v61 = vmax.f32 %v654_v9, %v658_v34  ;;  %v664_v1 = vmax.f32 %v660_v16, %v661_v10  ;;  %v596_v47 = vmax.f32 %v594_v13, %v595_v36  ;;  %v608_v15 = vmax.f32 %v1665_v29, %v1667_v11  ;;  %2003 = vst [vmem:[#allocation31_spill] sm:$0xff] %v1690_v19  ;;  %v1701_v11 = vld [vmem:[#allocation5 + $0x38] sm:$0xff] }
  0x6c   :  { %vm586_vm9 = vcmp.ne.f32.partialorder %v1674_v37, 0.0  ;;  %v590_v26 = vrot.slane %v589_v60, 2  ;;  %v602_v0 = vrot.slane %v601_v44, 4  ;;  %v615_v51 = vmax.f32 %v1670_v20, %v1672_v35 }
  0x6d   :  { %v659_v9 = vsel %vm586_vm9, %v1584_v45, -1.0  ;;  %v597_v31 = vrot.slane %v596_v47, 2  ;;  %v609_v13 = vrot.slane %v608_v15, 4  ;;  %v622_v33 = vmax.f32 %v1679_v52, %v1681_v50 }
  0x6e   :  { %v663_v16 = vmax.f32 %v655_v27, %v659_v9  ;;  %v591_v10 = vmax.f32 %v589_v60, %v590_v26  ;;  %v603_v36 = vmax.f32 %v601_v44, %v602_v0  ;;  %v616_v34 = vrot.slane %v615_v51, 4 }
  0x6f   :  { %v598_v23 = vmax.f32 %v596_v47, %v597_v31  ;;  %v610_v54 = vmax.f32 %v608_v15, %v609_v13  ;;  %v623_v4 = vrot.slane %v622_v33, 4  ;;  %v629_v55 = vmax.f32 %v1688_v48, %v1690_v19 }
  0x70   :  { %v665_v35 = vmax.f32 %v662_v61, %v663_v16  ;;  %v592_v56 = vrot.slane %v591_v10, 1  ;;  %v604_v32 = vrot.slane %v603_v36, 2  ;;  %v617_v30 = vmax.f32 %v615_v51, %v616_v34 }
  0x71   :  { %v599_v20 = vrot.slane %v598_v23, 1  ;;  %v611_v50 = vrot.slane %v610_v54, 2  ;;  %v624_v27 = vmax.f32 %v622_v33, %v623_v4  ;;  %v630_v60 = vrot.slane %v629_v55, 4 }
  0x72   :  { %v666_v44 = vmax.f32 %v664_v1, %v665_v35  ;;  %v593_v26 = vmax.f32 %v591_v10, %v592_v56  ;;  %v605_v47 = vmax.f32 %v603_v36, %v604_v32  ;;  %v618_v15 = vrot.slane %v617_v30, 2 }
  0x73   :  { %v600_v0 = vmax.f32 %v598_v23, %v599_v20  ;;  %v612_v9 = vmax.f32 %v610_v54, %v611_v50  ;;  %v625_v31 = vrot.slane %v624_v27, 2  ;;  %v631_v13 = vmax.f32 %v629_v55, %v630_v60 }
  0x74   :  { %667 = vmax.xlane.f32.xlu0 %v666_v44  ;;  %v606_v61 = vrot.slane %v605_v47, 1  ;;  %v619_v16 = vmax.f32 %v617_v30, %v618_v15  ;;  %v636_v51 = vmax.f32 %v1701_v11, %v1703_v8  ;;  %vm643_vm3 = vcmp.ne.f32.partialorder %v593_v26, 0.0 }
  0x75   :  { %v613_v34 = vrot.slane %v612_v9, 1  ;;  %v626_v19 = vmax.f32 %v624_v27, %v625_v31  ;;  %v632_v48 = vrot.slane %v631_v13, 2  ;;  %vm644_vm13 = vcmp.ne.f32.partialorder %v600_v0, 0.0 }
  0x76   :  { %v607_v4 = vmax.f32 %v605_v47, %v606_v61  ;;  %v620_v35 = vrot.slane %v619_v16, 1  ;;  %v637_v56 = vrot.slane %v636_v51, 4  ;;  %v697_v32 = vsel %vm643_vm3, %v1568_v3, -1.0 }
  0x77   :  { %v614_v54 = vmax.f32 %v612_v9, %v613_v34  ;;  %v627_v23 = vrot.slane %v626_v19, 1  ;;  %v633_v55 = vmax.f32 %v631_v13, %v632_v48  ;;  %v698_v30 = vsel %vm644_vm13, %v1570_v39, -1.0 }
  0x78   :  { %v621_v20 = vmax.f32 %v619_v16, %v620_v35  ;;  %v638_v50 = vmax.f32 %v636_v51, %v637_v56  ;;  %vm645_vm1 = vcmp.ne.f32.partialorder %v607_v4, 0.0  ;;  %v675_v1 = vsel %vm579_vm5, %v1568_v3, 1024.0 }
  0x79   :  { %v628_v33 = vmax.f32 %v626_v19, %v627_v23  ;;  %v634_v10 = vrot.slane %v633_v55, 1  ;;  %vm646_vm4 = vcmp.ne.f32.partialorder %v614_v54, 0.0  ;;  %v699_v36 = vsel %vm645_vm1, %v1572_v43, -1.0 }
  0x7a   :  { %v639_v27 = vrot.slane %v638_v50, 2  ;;  %vm647_vm7 = vcmp.ne.f32.partialorder %v621_v20, 0.0  ;;  %v700_v48 = vsel %vm646_vm4, %v1574_v41, -1.0  ;;  %v676_v60 = vsel %vm580_vm14, %v1570_v39, 1024.0 }
  0x7b   :  { %v635_v44 = vmax.f32 %v633_v55, %v634_v10  ;;  %vm648_vm10 = vcmp.ne.f32.partialorder %v628_v33, 0.0  ;;  %v701_v28 = vsel %vm647_vm7, %v1576_v38, -1.0  ;;  %v677_v19 = vsel %vm581_vm0, %v1572_v43, 1024.0 }
  0x7c   :  { %v640_v47 = vmax.f32 %v638_v50, %v639_v27  ;;  %v702_v15 = vsel %vm648_vm10, %v1578_v14, -1.0  ;;  %v705_v9 = vmax.f32 %v697_v32, %v701_v28  ;;  %v678_v31 = vsel %vm582_vm12, %v1574_v41, 1024.0 }
  0x7d   :  { %vm649_vm15 = vcmp.ne.f32.partialorder %v635_v44, 0.0  ;;  %v706_v53 = vmax.f32 %v698_v30, %v702_v15  ;;  %v679_v13 = vsel %vm583_vm6, %v1576_v38, 1024.0  ;;  %v680_v40 = vsel %vm584_vm11, %v1578_v14, 1024.0  ;;  %v2004_v15 = vld [vmem:[#allocation27_spill] sm:$0xff] }
  0x7e   :  { %v641_v61 = vrot.slane %v640_v47, 1  ;;  %v703_v16 = vsel %vm649_vm15, %v1580_v49, -1.0  ;;  %v681_v51 = vsel %vm585_vm8, %v1580_v49, 1024.0  ;;  %v682_v58 = vsel %vm586_vm9, %v1584_v45, 1024.0 }
  0x7f   :  { %v707_v34 = vmax.f32 %v699_v36, %v703_v16  ;;  %v709_v35 = vmax.f32 %v705_v9, %v706_v53  ;;  %v683_v18 = vmin.f32 %v675_v1, %v679_v13  ;;  %v684_v56 = vmin.f32 %v676_v60, %v680_v40  ;;  %v2005_v53 = vld [vmem:[#allocation21_spill] sm:$0xff]  ;;  %v2006_v13 = vld [vmem:[#allocation26_spill] sm:$0xff] }
  0x80   :  { %v642_v32 = vmax.f32 %v640_v47, %v641_v61  ;;  %v685_v23 = vmin.f32 %v677_v19, %v681_v51  ;;  %v686_v12 = vmin.f32 %v678_v31, %v682_v58  ;;  %v719_v55 = vsel %vm643_vm3, %v1568_v3, 1024.0 }
  0x81   :  { %v687_v30 = vmin.f32 %v683_v18, %v684_v56  ;;  %v720_v50 = vsel %vm644_vm13, %v1570_v39, 1024.0  ;;  %v721_v21 = vsel %vm645_vm1, %v1572_v43, 1024.0  ;;  %v722_v37 = vsel %vm646_vm4, %v1574_v41, 1024.0  ;;  %v2008_v56 = vld [vmem:[#allocation19_spill] sm:$0xff] }
  0x82   :  { %vm650_vm2 = vcmp.ne.f32.partialorder %v642_v32, 0.0  ;;  %v688_v10 = vmin.f32 %v685_v23, %v686_v12  ;;  %v723_v1 = vsel %vm647_vm7, %v1576_v38, 1024.0  ;;  %v724_v36 = vsel %vm648_vm10, %v1578_v14, 1024.0  ;;  %v2009_v32 = vld [vmem:[#allocation30_spill] sm:$0xff] }
  0x83   :  { %v704_v3 = vsel %vm650_vm2, %v1584_v45, -1.0  ;;  %v725_v26 = vsel %vm649_vm15, %v1580_v49, 1024.0  ;;  %v726_v39 = vsel %vm650_vm2, %v1584_v45, 1024.0  ;;  %v727_v0 = vmin.f32 %v719_v55, %v723_v1  ;;  %v2010_v55 = vld [vmem:[#allocation22_spill] sm:$0xff] }
  0x84   :  { %v708_v43 = vmax.f32 %v700_v48, %v704_v3  ;;  %v689_v4 = vmin.f32 %v687_v30, %v688_v10  ;;  %v728_v54 = vmin.f32 %v720_v50, %v724_v36  ;;  %v729_v41 = vmin.f32 %v721_v21, %v725_v26  ;;  %v2011_v30 = vld [vmem:[#allocation28_spill] sm:$0xff] }
  0x85   :  { %v730_v27 = vmin.f32 %v722_v37, %v726_v39  ;;  %v444_v20 = vmul.f32 %v1623_v2, %v1326_v17  ;;  %v445_v38 = vmul.f32 %v1630_v5, %v1333_v22  ;;  %v446_v33 = vmul.f32 %v1653_v25, %v1342_v57  ;;  %v2013_v37 = vld [vmem:[#allocation29_spill] sm:$0xff] }
  0x86   :  { %v710_v14 = vmax.f32 %v707_v34, %v708_v43  ;;  %690 = vmin.xlane.f32.xlu0 %v689_v4  ;;  %v731_v49 = vmin.f32 %v727_v0, %v728_v54  ;;  %v447_v45 = vmul.f32 %v1665_v29, %v1347_v24  ;;  %v493_v28 = vadd.f32 %v1625_v62, %v1477_v42  ;;  %v2015_v0 = vld [vmem:[#allocation24_spill] sm:$0xff]  ;;  %v2016_v43 = vld [vmem:[#allocation31_spill] sm:$0xff] }
  0x87   :  { %v732_v60 = vmin.f32 %v729_v41, %v730_v27  ;;  %v460_v44 = vadd.f32 %v445_v38, %v444_v20  ;;  %v494_v19 = vadd.f32 %v1632_v6, %v1493_v46  ;;  %v495_v47 = vadd.f32 %v1655_v63, %v1499_v7  ;;  %v2017_v41 = vld [vmem:[#allocation25_spill] sm:$0xff] }
  0x88   :  { %v711_v48 = vmax.f32 %v709_v35, %v710_v14  ;;  %v448_v9 = vmul.f32 %v2004_v15, %v1352_v59  ;;  %v496_v40 = vadd.f32 %v2006_v13, %v2005_v53  ;;  %v485_v16 = vadd.f32 %v1623_v2, %v1326_v17  ;;  %v2007_v35 = vld [vmem:[#allocation18_spill] sm:$0xff] }
  0x89   :  { %v461_v31 = vadd.f32 %v460_v44, %v446_v33  ;;  %v510_v61 = vadd.f32 %v494_v19, %v493_v28  ;;  %v486_v51 = vadd.f32 %v1630_v5, %v1333_v22  ;;  %v487_v58 = vadd.f32 %v1653_v25, %v1342_v57  ;;  %v2012_v5 = vld [vmem:[#allocation23_spill] sm:$0xff] }
  0x8a   :  { %712 = vmax.xlane.f32.xlu1 %v711_v48  ;;  %v733_v34 = vmin.f32 %v731_v49, %v732_v60  ;;  %v449_v18 = vmul.f32 %v1679_v52, %v2007_v35  ;;  %v450_v23 = vmul.f32 %v2009_v32, %v2008_v56  ;;  %v497_v50 = vadd.f32 %v2011_v30, %v2010_v55 }
  0x8b   :  { %v462_v12 = vadd.f32 %v461_v31, %v447_v45  ;;  %v511_v21 = vadd.f32 %v510_v61, %v495_v47  ;;  %v488_v17 = vadd.f32 %v1665_v29, %v1347_v24  ;;  %v501_v2 = vadd.f32 %v486_v51, %v485_v16  ;;  %v2014_v24 = vld [vmem:[#allocation20_spill] sm:$0xff] }
  0x8c   :  { %v498_v57 = vadd.f32 %v2013_v37, %v2012_v5  ;;  %v452_v25 = vmul.f32 %v1625_v62, %v1477_v42  ;;  %v453_v10 = vmul.f32 %v1632_v6, %v1493_v46  ;;  %v489_v36 = vadd.f32 %v2004_v15, %v1352_v59 }
  0x8d   :  { %v463_v22 = vadd.f32 %v462_v12, %v448_v9  ;;  %v512_v1 = vadd.f32 %v511_v21, %v496_v40  ;;  %v502_v3 = vadd.f32 %v501_v2, %v487_v58  ;;  %v454_v26 = vmul.f32 %v1655_v63, %v1499_v7 }
  0x8e   :  { %v451_v29 = vmul.f32 %v1701_v11, %v2014_v24  ;;  %v499_v4 = vadd.f32 %v2016_v43, %v2015_v0  ;;  %v490_v42 = vadd.f32 %v1679_v52, %v2007_v35  ;;  %v455_v6 = vmul.f32 %v2006_v13, %v2005_v53 }
  0x8f   :  { %v464_v39 = vadd.f32 %v463_v22, %v449_v18  ;;  %v513_v62 = vadd.f32 %v512_v1, %v497_v50  ;;  %v503_v46 = vadd.f32 %v502_v3, %v488_v17  ;;  %v469_v59 = vadd.f32 %v453_v10, %v452_v25 }
  0x90   :  { %v500_v7 = vadd.f32 %v1703_v8, %v2017_v41  ;;  %v491_v63 = vadd.f32 %v2009_v32, %v2008_v56  ;;  %v456_v38 = vmul.f32 %v2011_v30, %v2010_v55  ;;  %v492_v33 = vadd.f32 %v1701_v11, %v2014_v24 }
  0x91   :  { %v465_v54 = vadd.f32 %v464_v39, %v450_v23  ;;  %v514_v27 = vadd.f32 %v513_v62, %v498_v57  ;;  %v504_v20 = vadd.f32 %v503_v46, %v489_v36  ;;  %v470_v52 = vadd.f32 %v469_v59, %v454_v26 }
  0x92   :  { %734 = vmin.xlane.f32.xlu1 %v733_v34  ;;  %v457_v45 = vmul.f32 %v2013_v37, %v2012_v5  ;;  %v458_v19 = vmul.f32 %v2016_v43, %v2015_v0  ;;  %v459_v9 = vmul.f32 %v1703_v8, %v2017_v41  ;;  %vm73_vm5 = vcmask 0  }
  0x93   :  { %v466_v14 = vadd.f32 %v465_v54, %v451_v29  ;;  %v515_v49 = vadd.f32 %v514_v27, %v499_v4  ;;  %v505_v60 = vadd.f32 %v504_v20, %v490_v42  ;;  %v471_v48 = vadd.f32 %v470_v52, %v455_v6 }
  0x94   :  { %v1070_v40 = vmov -1.0   ;;  %vm68_vm14 = vcmask 7168   ;;  %v1071_v8 = vmov 0.0   ;;  %v1072_v51 = vmov 1024.0  }
  0x95   :  { %467 = vadd.xlane.f32.xlu2 %v466_v14  ;;  %v516_v44 = vadd.f32 %v515_v49, %v500_v7  ;;  %v506_v28 = vadd.f32 %v505_v60, %v491_v63  ;;  %v472_v47 = vadd.f32 %v471_v48, %v456_v38  ;;  %74 = vst.msk [vmem:[#allocation7] sm:$0x1] %vm73_vm5, %v1070_v40 }
  0x96   :  { %76 = vst.msk [vmem:[#allocation10] sm:$0x1] %vm73_vm5, %v1070_v40 }
  0x97   :  { %v507_v15 = vadd.f32 %v506_v28, %v492_v33  ;;  %v473_v31 = vadd.f32 %v472_v47, %v457_v45  ;;  %69 = vst.msk [vmem:[%s1891_s2] sm:$0xff] %vm68_vm14, %v1071_v8 }
  0x98   :  { %70 = vst.msk [vmem:[%s1891_s2 + $0x8] sm:$0xff] %vm68_vm14, %v1071_v8 }
  0x99   :  { %508 = vadd.xlane.f32.xlu0 %v507_v15  ;;  %v474_v11 = vadd.f32 %v473_v31, %v458_v19  ;;  %71 = vst.msk [vmem:[%s1892_s3] sm:$0xff] %vm68_vm14, %v1071_v8 }
  0x9a   :  { %517 = vadd.xlane.f32.xlu1 %v516_v44  ;;  %72 = vst.msk [vmem:[%s1892_s3 + $0x8] sm:$0xff] %vm68_vm14, %v1071_v8 }
  0x9b   :  { %v475_v53 = vadd.f32 %v474_v11, %v459_v9  ;;  %75 = vst.msk [vmem:[#allocation8] sm:$0x1] %vm73_vm5, %v1072_v51 }
  0x9c   :  { %77 = vst.msk [vmem:[#allocation11] sm:$0x1] %vm73_vm5, %v1072_v51  ;;  %v651_v56 = vld [vmem:[#allocation7] sm:$0x1] }
  0x9d   :  { %476 = vadd.xlane.f32.xlu2 %v475_v53  ;;  %v696_v10 = vld [vmem:[#allocation10] sm:$0x1] }
  0x9e   :  { %v442_v34 = vld [vmem:[%s1891_s2] sm:$0xff] }
  0x9f   :  { %v443_v30 = vld [vmem:[%s1891_s2 + $0x8] sm:$0xff] }
  0xa0   :  { %v483_v55 = vld [vmem:[%s1892_s3] sm:$0xff] }
  0xa1   :  { %v484_v23 = vld [vmem:[%s1892_s3 + $0x8] sm:$0xff] }
  0xa2   :  { %v674_v37 = vld [vmem:[#allocation8] sm:$0x1] }
  0xa3   :  { %v718_v3 = vld [vmem:[#allocation11] sm:$0x1] }
  0xe7   :  { %v668_v13 = vpop.xlane.xlu0 %667 }
  0xe8   :  { %829 = vpush %v668_v13 }
  0xf9   :  { %v691_v61 = vpop.xlane.xlu0 %690 }
  0xfa   :  { %831 = vpush %v691_v61 }
  0xfd   :  { %v713_v16 = vpop.xlane.xlu1 %712 }
  0xfe   :  { %833 = vpush %v713_v16 }
 0x105   :  { %v735_v58 = vpop.xlane.xlu1 %734 }
 0x106   :  { %835 = vpush %v735_v58 }
 0x108   :  { %v468_v35 = vpop.xlane.xlu2 %467 }
 0x109   :  { %v478_v18 = vadd.f32 %v468_v35, %v442_v34 }
 0x10b   :  { %481 = vst.msk [vmem:[%s1891_s2] sm:$0xff] %vm68_vm14, %v478_v18 }
 0x10c   :  { %v509_v12 = vpop.xlane.xlu0 %508 }
 0x10d   :  { %v518_v32 = vpop.xlane.xlu1 %517  ;;  %v519_v17 = vadd.f32 %v509_v12, %v483_v55 }
 0x10e   :  { %v520_v21 = vadd.f32 %v518_v32, %v484_v23 }
 0x10f   :  { %521 = vst.msk [vmem:[%s1892_s3] sm:$0xff] %vm68_vm14, %v519_v17 }
 0x110   :  { %v477_v2 = vpop.xlane.xlu2 %476  ;;  %522 = vst.msk [vmem:[%s1892_s3 + $0x8] sm:$0xff] %vm68_vm14, %v520_v21  ;;  %s1075_s3 = smov [#allocation10]  }
 0x111   :  { %v479_v5 = vadd.f32 %v477_v2, %v443_v30  ;;  %s771_s21 = sshll.u32 %s1075_s3, 4  ;;  %s772_s21 = int_to_ptr.vmem [resolvable:$true] %s771_s21 }
 0x113   :  { %482 = vst.msk [vmem:[%s1891_s2 + $0x8] sm:$0xff] %vm68_vm14, %v479_v5 }
 0x119   :  { %s830_s28 = spop %829 }
 0x11a   :  { %v670_v50 = vstv %s830_s28  ;;  %s784_s28 = sshll.u32 %s1896_s7, 4  ;;  %s785_s28 = int_to_ptr.hbm [resolvable:$true] %s784_s28 }
 0x11b   :  { %v671_v22 = vmax.f32 %v651_v56, %v670_v50 }
 0x11d   :  { %673 = vst.msk [vmem:[#allocation7] sm:$0x1] %vm73_vm5, %v671_v22 }
 0x11e   :  { %754 = dma.vmem_to_hbm [thread:$0]  %s750_s24, 16, %s752_s27, [#allocation4]  }
 0x11f   :  { %s773_s24 = sshll.u32 %s1895_s6, 4  ;;  %s774_s24 = int_to_ptr.hbm [resolvable:$true] %s773_s24 }
 0x12b   :  { %s832_s20 = spop %831 }
 0x12c   :  { %v693_v57 = vstv %s832_s20 }
 0x12d   :  { %v694_v25 = vmin.f32 %v674_v37, %v693_v57 }
 0x12f   :  { %695 = vst.msk [vmem:[#allocation8] sm:$0x1] %vm73_vm5, %v694_v25  ;;  %s834_s2 = spop %833 }
 0x130   :  { %v715_v1 = vstv %s834_s2  ;;  %765 = dma.vmem_to_hbm [thread:$0]  %s761_s16, 16, %s763_s19, [#allocation9]  }
 0x131   :  { %v716_v36 = vmax.f32 %v696_v10, %v715_v1 }
 0x133   :  { %717 = vst.msk [vmem:[#allocation10] sm:$0x1] %vm73_vm5, %v716_v36 }
 0x134   :  { %776 = dma.vmem_to_hbm [thread:$0]  %s772_s21, 16, %s774_s24, [#allocation9]  }
 0x137   :  { %s836_s29 = spop %835 }
 0x138   :  { %v737_v26 = vstv %s836_s29 }
 0x139   :  { %v738_v24 = vmin.f32 %v718_v3, %v737_v26 }
 0x13b   :  { %739 = vst.msk [vmem:[#allocation11] sm:$0x1] %vm73_vm5, %v738_v24 }
 0x13c   :  { %787 = dma.vmem_to_hbm [thread:$0]  %s783_s25, 16, %s785_s28, [#allocation12]  }
 0x13d   :  { %1060 = dma.done.wait [#allocation4], 16  }
 0x13e   :  { %1061 = vsyncadd [#allocation4], 4294967280 }
 0x13f   :  { %1062 = dma.done.wait [#allocation9], 32  }
 0x140   :  { %1063 = vsyncadd [#allocation9], 4294967264 }
 0x141   :  { %1064 = dma.done.wait [#allocation12], 16  }
 0x142   :  { %1065 = vsyncadd [#allocation12], 4294967280 }
 0x143   :  { %808 = vsyncpa [#allocation3], 1 }
 0x144   :  { %809 = vsyncpa [#allocation6], 1 }
 0x145   :  { %810 = vsyncpa [#allocation4], 1 }
 0x146   :  { %811 = vsyncpa [#allocation9], 1 }
 0x147   :  { %812 = vsyncpa [#allocation12], 1 }

</bundles_post_ra>
